<compile_context>
chip_gen: v7x
topology: tpu7x:2x2x1
jax: 0.10.0
libtpu: 0.0.40
codegen_flags: <defaults>
</compile_context>

<pallas_src>
import jax
import jax.numpy as jnp
from jax.experimental import pallas as pl
from jax.experimental.pallas import tpu as pltpu


_TR_MAX = 4096        # max rows per grid step; (4096, 128) f32 = 2 MiB input block
_SMALL_BATCH = 1024   # below this, plain XLA is cheaper than a Pallas launch


def _round_up(n, m):
    return ((n + m - 1) // m) * m


def _linear_kernel(x_ref, w_ref, b_ref, o_ref):
    # x_ref: VMEM (tr, 128)  -- 32 samples per row, 4 features each (row-major view)
    # w_ref: VMEM (128, 32)  -- block-diagonal expanded weights, W[4k+j, k] = w[j]
    # b_ref: SMEM (1,)       -- bias scalar
    # o_ref: VMEM (tr, 32)   -- one output per sample, compact
    y = jnp.dot(x_ref[...], w_ref[...], preferred_element_type=jnp.float32)
    o_ref[...] = (y + b_ref[0]).astype(o_ref.dtype)


def _linear_pallas_impl(x, w, b):
    """x: (B, 4) f32, w: (4, 1), b: (1,)  ->  (B, 1). Pallas path."""
    B = x.shape[0]

    # 32 samples pack into one 128-lane row.  Keep batch a multiple of 32
    # upstream to stay on the copy-free bitcast path; the pad below is only a
    # tail fix-up (and guarantees >= 8 rows so blocks are (8,128)-friendly).
    B_pad = max(_round_up(B, 32), 256)
    if B_pad != B:
        x = jnp.pad(x, ((0, B_pad - B), (0, 0)))
    R = B_pad // 32
    # Row-major (B_pad, 4) -> (R, 128): pure reshape/bitcast, no data movement.
    x_resh = x.reshape(R, 128)

    # Expanded weights: (128, 32) with W[4k+j, k] = w[j]; built once per call,
    # negligible cost, lets one MXU dot produce the compact per-sample output.
    rows = jnp.arange(128)
    w_big = jnp.zeros((128, 32), jnp.float32).at[rows, rows // 4].set(
        jnp.tile(w[:, 0].astype(jnp.float32), 32))
    b_arr = b.astype(jnp.float32).reshape((1,))

    # Tile rows: big tiles (up to 2 MiB input block), but keep >= 2 grid steps
    # for mid/large batches so v7x megacore can shard them across both TCs.
    tr = min(_TR_MAX, max(8, _round_up(pl.cdiv(R, 2), 8)))
    grid = (pl.cdiv(R, tr),)   # ragged last block handled by Pallas (no jnp.pad)

    out = pl.pallas_call(
        _linear_kernel,
        out_shape=jax.ShapeDtypeStruct((R, 32), jnp.float32),
        grid=grid,
        in_specs=[
            pl.BlockSpec((tr, 128), lambda i: (i, 0)),                 # activations
            pl.BlockSpec((128, 32), lambda i: (0, 0)),                 # weights
            pl.BlockSpec(memory_space=pltpu.MemorySpace.SMEM),         # bias
        ],
        out_specs=pl.BlockSpec((tr, 32), lambda i: (i, 0)),
        compiler_params=pltpu.CompilerParams(
            dimension_semantics=("parallel",)),
    )(x_resh, w_big, b_arr)

    # (R, 32) -> (B_pad, 1) is a free reshape; drop the padded tail rows.
    return out.reshape(B_pad, 1)[:B]


def _linear_forward_impl(x, w, b):
    """Dispatcher: tiny batches go to plain XLA (fusable), big ones to Pallas."""
    if x.shape[0] < _SMALL_BATCH:
        # TODO(synk): at these sizes launch overhead dominates; let XLA fuse it.
        return x @ w + b.reshape(1, -1)
    return _linear_pallas_impl(x, w, b)


# jit hoisted to module scope: compiled once per input shape, no per-call wrapper.
linear_pallas = jax.jit(_linear_pallas_impl)
linear_forward = jax.jit(_linear_forward_impl)


class PallasNN:
    """Mirror of PyTorchNN: layer1 = Linear(in_features=4, out_features=1)."""

    def __init__(self, key):
        k_w, k_b = jax.random.split(key)
        in_f, out_f = 4, 1
        bound = 1.0 / jnp.sqrt(jnp.float32(in_f))  # torch default init
        self.w = jax.random.uniform(
            k_w, (in_f, out_f), dtype=jnp.float32, minval=-bound, maxval=bound)
        self.b = jax.random.uniform(
            k_b, (out_f,), dtype=jnp.float32, minval=-bound, maxval=bound)

    def __call__(self, x1):
        return linear_forward(x1, self.w, self.b)


if __name__ == "__main__":
    key = jax.random.PRNGKey(0)
    k_param, k1, k2, k3 = jax.random.split(key, 4)

    model = PallasNN(k_param)

    # Primary demo: small batch, forced through the Pallas kernel.
    B = 256
    x1 = jax.random.normal(k1, (B, 4), dtype=jnp.float32)
    out = jax.block_until_ready(linear_pallas(x1, model.w, model.b))
    ref = x1 @ model.w + model.b.reshape(1, -1)
    assert out.shape == (B, 1)
    assert jnp.allclose(out, ref, atol=1e-5, rtol=1e-5)

    # Dispatcher sanity: tiny batch takes the plain-XLA path.
    x2 = jax.random.normal(k2, (8, 4), dtype=jnp.float32)
    out2 = jax.block_until_ready(model(x2))
    assert out2.shape == (8, 1)
    assert jnp.allclose(out2, x2 @ model.w + model.b.reshape(1, -1),
                        atol=1e-5, rtol=1e-5)

    # Dispatcher sanity: larger ragged batch -> multi-step Pallas grid
    # (exercises the cdiv ragged last block and the tail padding).
    B3 = 4500
    x3 = jax.random.normal(k3, (B3, 4), dtype=jnp.float32)
    out3 = jax.block_until_ready(model(x3))
    ref3 = x3 @ model.w + model.b.reshape(1, -1)
    assert out3.shape == (B3, 1)
    assert jnp.allclose(out3, ref3, atol=1e-5, rtol=1e-5)

    print("KERNEL_OK")
</pallas_src>

<mosaic_0001>
module attributes {stable_mosaic.version = 11 : i64} {
  func.func @_linear_kernel(%arg0: i32, %arg1: memref<8x128xf32, #tpu.memory_space<vmem>>, %arg2: memref<128x32xf32, #tpu.memory_space<vmem>>, %arg3: memref<1xf32, #tpu.memory_space<smem>>, %arg4: memref<8x32xf32, #tpu.memory_space<vmem>>) attributes {dimension_semantics = [#tpu.dimension_semantics<parallel>], iteration_bounds = array<i64: 1>, scalar_prefetch = 0 : i64, scratch_operands = 0 : i64, tpu.core_type = #tpu.core_type<tc>, window_params = [{transform_indices = @transform_0, window_bounds = array<i64: 8, 128>}, {pipeline_mode = #tpu.pipeline_mode<synchronous>, transform_indices = @transform_1, window_bounds = array<i64: 128, 32>}, {transform_indices = @transform_2, window_bounds = array<i64: 1>}, {transform_indices = @transform_3, window_bounds = array<i64: 8, 32>}]} {
    %c0 = arith.constant 0 : index
    %c0_0 = arith.constant 0 : index
    %0 = vector.load %arg1[%c0, %c0_0] : memref<8x128xf32, #tpu.memory_space<vmem>>, vector<8x128xf32>
    %c0_1 = arith.constant 0 : index
    %c0_2 = arith.constant 0 : index
    %1 = vector.load %arg2[%c0_1, %c0_2] : memref<128x32xf32, #tpu.memory_space<vmem>>, vector<128x32xf32>
    %cst = arith.constant dense<0.000000e+00> : vector<8x32xf32>
    %2 = tpu.matmul %0, %1, %cst {dimension_numbers = #tpu.dot_dimension_numbers<[1], [0], [0], [1], [0, 0, 1, 1], [], []>} : vector<8x128xf32>, vector<128x32xf32>, vector<8x32xf32> -> vector<8x32xf32>
    %c0_3 = arith.constant 0 : index
    %3 = memref.load %arg3[%c0_3] : memref<1xf32, #tpu.memory_space<smem>>
    %4 = vector.broadcast %3 : f32 to vector<8x32xf32>
    %5 = arith.addf %2, %4 : vector<8x32xf32>
    %c0_4 = arith.constant 0 : index
    %c0_5 = arith.constant 0 : index
    %6 = vector.load %arg4[%c0_4, %c0_5] : memref<8x32xf32, #tpu.memory_space<vmem>>, vector<8x32xf32>
    tpu.vector_store %arg4[%c0_4, %c0_5], %5 {strides = array<i32>} : memref<8x32xf32, #tpu.memory_space<vmem>>, vector<8x32xf32>,
    return
  }
  func.func @transform_0(%arg0: i32) -> (i32, i32) {
    %c0_i32 = arith.constant 0 : i32
    %c0_i32_0 = arith.constant 0 : i32
    return %arg0, %c0_i32 : i32, i32
  }
  func.func @transform_1(%arg0: i32) -> (i32, i32) {
    %c0_i32 = arith.constant 0 : i32
    %c0_i32_0 = arith.constant 0 : i32
    %c0_i32_1 = arith.constant 0 : i32
    return %c0_i32, %c0_i32_0 : i32, i32
  }
  func.func @transform_2(%arg0: i32) -> i32 {
    %c0_i32 = arith.constant 0 : i32
    %c0_i32_0 = arith.constant 0 : i32
    return %c0_i32 : i32
  }
  func.func @transform_3(%arg0: i32) -> (i32, i32) {
    %c0_i32 = arith.constant 0 : i32
    %c0_i32_0 = arith.constant 0 : i32
    return %arg0, %c0_i32 : i32, i32
  }
}

</mosaic_0001>

<bundles_post_ra>
// kernel: tile.6
= control target key start
LH: loop header
LB: loop body
LE: loop exit
PB: predicated region body
PF: predicated region fallthrough
CT: control target
= control target key end

     0   :  { %s40_s0 = inlined_call_operand.vmem [shape: f32[4], index: 0, kind: input, shape index: {}]   ;;  %s41_s1 = inlined_call_operand.vmem [shape: f32[32,4], index: 1, kind: output, shape index: {}]  }
   0x1   :  { %v4_v0 = vld [vmem:[%s40_s0] ss:$0 sm:$0xff] }
   0x2   :  { %5 = vst [vmem:[%s41_s1] sm:$0xff] %v4_v0  ;;  %12 = vst [vmem:[%s41_s1 + $0x8] sm:$0xff] %v4_v0 }
   0x3   :  { %13 = vst [vmem:[%s41_s1 + $0x10] sm:$0xff] %v4_v0  ;;  %14 = vst [vmem:[%s41_s1 + $0x18] sm:$0xff] %v4_v0 }

// kernel: _linear_pallas_impl.1
= control target key start
LH: loop header
LB: loop body
LE: loop exit
PB: predicated region body
PF: predicated region fallthrough
CT: control target
= control target key end

     0   :  { %v189_v0 = vmov 0.0|0.0   ;;  %vm190_vm0 = vmmov 0   ;;  %v191_v4 = vmov 0.0   ;;  %vm104_vm1 = vcmask 261120   ;;  %s269_s1 = inlined_call_operand.vmem [shape: f32[128,32], index: 1, kind: input, shape index: {}]   ;;  %s270_s0 = inlined_call_operand.vmem [shape: f32[8,128], index: 0, kind: input, shape index: {}]   ;;  %s271_s2 = inlined_call_operand.<no memory space> [shape: f32[1], index: 2, kind: input, shape index: {}]   ;;  %s272_s3 = inlined_call_operand.vmem [shape: f32[8,32], index: 3, kind: output, shape index: {}]  }
   0x1   :  { %162 = vmatprep.subr.bf16.mxu0 %v189_v0  ;;  %v16_v1 = vld [vmem:[%s269_s1] sm:$0xff]  ;;  %v17_v2 = vld [vmem:[%s269_s1 + $0x8] sm:$0xff]  ;;  %v18_v3 = vld [vmem:[%s269_s1 + $0x10] sm:$0xff]  ;;  %159 = vmatprep.mubr.msk.f32.mxu0 %vm190_vm0, %v191_v4  ;;  %v33_v27 = vstv %s271_s2 }
   0x2   :  { %v163_v5 = vpack.c.bf16 %v17_v2, %v16_v1  ;;  %v19_v6 = vld [vmem:[%s269_s1 + $0x18] sm:$0xff]  ;;  %v20_v8 = vld [vmem:[%s269_s1 + $0x20] sm:$0xff]  ;;  %v21_v9 = vld [vmem:[%s269_s1 + $0x28] sm:$0xff] }
   0x3   :  { %v166_v7 = vpack.c.bf16 %v19_v6, %v18_v3  ;;  %v169_v10 = vpack.c.bf16 %v21_v9, %v20_v8  ;;  %v22_v11 = vld [vmem:[%s269_s1 + $0x30] sm:$0xff]  ;;  %v23_v12 = vld [vmem:[%s269_s1 + $0x38] sm:$0xff]  ;;  %v24_v14 = vld [vmem:[%s269_s1 + $0x40] sm:$0xff] }
   0x4   :  { %164 = vmatpush3.bf16.msra.mxu0 %v163_v5  ;;  %v172_v13 = vpack.c.bf16 %v23_v12, %v22_v11  ;;  %v25_v15 = vld [vmem:[%s269_s1 + $0x48] sm:$0xff]  ;;  %v26_v17 = vld [vmem:[%s269_s1 + $0x50] sm:$0xff]  ;;  %v27_v18 = vld [vmem:[%s269_s1 + $0x58] sm:$0xff] }
   0x5   :  { %165 = vmatprep.subr.bf16.mxu0 %v189_v0  ;;  %v175_v16 = vpack.c.bf16 %v25_v15, %v24_v14  ;;  %v178_v19 = vpack.c.bf16 %v27_v18, %v26_v17  ;;  %v28_v20 = vld [vmem:[%s269_s1 + $0x60] sm:$0xff]  ;;  %v29_v21 = vld [vmem:[%s269_s1 + $0x68] sm:$0xff]  ;;  %v30_v23 = vld [vmem:[%s269_s1 + $0x70] sm:$0xff] }
   0x6   :  { %v181_v22 = vpack.c.bf16 %v29_v21, %v28_v20  ;;  %v31_v24 = vld [vmem:[%s269_s1 + $0x78] sm:$0xff]  ;;  %v15_v26 = vld [vmem:[%s270_s0] sm:$0xff] }
   0x7   :  { %v184_v25 = vpack.c.bf16 %v31_v24, %v30_v23 }
   0x8   :  { %167 = vmatpush3.bf16.msra.mxu0 %v166_v7 }
   0x9   :  { %168 = vmatprep.subr.bf16.mxu0 %v189_v0 }
   0xc   :  { %170 = vmatpush3.bf16.msra.mxu0 %v169_v10 }
   0xd   :  { %171 = vmatprep.subr.bf16.mxu0 %v189_v0 }
  0x10   :  { %173 = vmatpush3.bf16.msra.mxu0 %v172_v13 }
  0x11   :  { %174 = vmatprep.subr.bf16.mxu0 %v189_v0 }
  0x14   :  { %176 = vmatpush3.bf16.msra.mxu0 %v175_v16 }
  0x15   :  { %177 = vmatprep.subr.bf16.mxu0 %v189_v0 }
  0x18   :  { %179 = vmatpush3.bf16.msra.mxu0 %v178_v19 }
  0x19   :  { %180 = vmatprep.subr.bf16.mxu0 %v189_v0 }
  0x1c   :  { %182 = vmatpush3.bf16.msra.mxu0 %v181_v22 }
  0x1d   :  { %183 = vmatprep.subr.bf16.mxu0 %v189_v0 }
  0x20   :  { %185 = vmatpush3.bf16.msra.mxu0 %v184_v25 }
  0x23   :  { %160 = vmatmul.mubr.f32.vlgmr.msra.gmra.mrb[0].mxu0 %v15_v26 }
  0xf6   :  { %v100_v28 = vpop.f32.mrb[0].mxu0 }
  0xf7   :  { %v101_v29 = vadd.f32 %v100_v28, %v33_v27  ;;  %v161_v30 = vpop.f32.mrb[1].mxu0 }
  0xf9   :  { %105 = vst.msk [vmem:[%s272_s3] sm:$0xff] %vm104_vm1, %v101_v29 }

</bundles_post_ra>
